<compile_context>
chip_gen: v7x
topology: tpu7x:2x2x1
jax: 0.10.0
libtpu: 0.0.40
codegen_flags: <defaults>
</compile_context>

<pallas_src>
import jax
import jax.numpy as jnp
from jax.experimental import pallas as pl
from jax.experimental.pallas import tpu as pltpu

D_EMBED = 1280   # Virchow2 hidden dim -> 2 * 1280 == 2560 fc input, as in the module
N_REG = 4        # tokens 1..4 are register tokens; patch tokens start at index 5
PATCH = 8        # synthetic patch size
_VMEM_LIMIT = 48 * 1024 * 1024   # safe on v7x (64 MiB physical), ample on v5e/v6e


def _round_up(x, m):
    return ((x + m - 1) // m) * m


# ---------------------------------------------------------------------------
# Fused kernel: patch-embed of the pre-averaged patch vector + fc head.
#   xm_ref: [TB, Kp] bf16   (per-image mean patch vector, zero-padded K)
#   w1_ref: [Kp, D]  bf16   b1_ref: [1, D]  f32
#   w2_ref: [D, Op]  bf16   b2_ref: [1, Op] f32  (cls contribution pre-folded)
#   o_ref : [TB, Op] f32
# ---------------------------------------------------------------------------
def _fused_kernel(xm_ref, w1_ref, b1_ref, w2_ref, b2_ref, o_ref):
    emb = jnp.dot(xm_ref[...], w1_ref[...],
                  preferred_element_type=jnp.float32) + b1_ref[...]      # [TB, D] f32
    o_ref[...] = (jnp.dot(emb.astype(jnp.bfloat16), w2_ref[...],
                          preferred_element_type=jnp.float32)
                  + b2_ref[...]).astype(o_ref.dtype)                     # [TB, Op]


def fused_head(xm, w1, b1, w2, b2):
    # xm: [B, Kp] bf16 ; w1: [Kp, D] bf16 ; b1: [1, D] f32
    # w2: [D, Op] bf16 ; b2: [1, Op] f32      ->  [B, Op] f32
    B, Kp = xm.shape
    D = w1.shape[1]
    Op = w2.shape[1]

    # Batch padding / tiling: >= 2 parallel grid steps when possible (v7x: 2 TCs).
    B_pad = _round_up(max(B, 16), 16)
    TB = max(8, min(256, B_pad // 2))
    TB = _round_up(TB, 8)
    B_pad = _round_up(B_pad, TB)
    xm_p = jnp.pad(xm, ((0, B_pad - B), (0, 0)))

    out = pl.pallas_call(
        _fused_kernel,
        out_shape=jax.ShapeDtypeStruct((B_pad, Op), jnp.float32),
        grid=(B_pad // TB,),
        in_specs=[
            pl.BlockSpec((TB, Kp), lambda i: (i, 0)),
            pl.BlockSpec((Kp, D), lambda i: (0, 0)),
            pl.BlockSpec((1, D), lambda i: (0, 0)),
            pl.BlockSpec((D, Op), lambda i: (0, 0)),
            pl.BlockSpec((1, Op), lambda i: (0, 0)),
        ],
        out_specs=pl.BlockSpec((TB, Op), lambda i: (i, 0)),
        compiler_params=pltpu.CompilerParams(
            dimension_semantics=("parallel",),
            vmem_limit_bytes=_VMEM_LIMIT),
    )(xm_p, w1, b1, w2, b2)
    return out[:B]


# ---------------------------------------------------------------------------
# One-time parameter preparation (transpose / split / cls-fold / pad / bf16).
# ---------------------------------------------------------------------------
def prepare_params(params):
    D = D_EMBED
    K = params["w_patch"].shape[0]
    Kp = _round_up(K, 128)                        # 128 is enough on all gens
    O = params["w_fc"].shape[0]
    Op = _round_up(O, 128)                        # lane-dense head output

    w_fc_t = jnp.transpose(params["w_fc"])        # [2D, O] f32
    cls = params["cls_token"].reshape(1, D)       # [1, D] f32
    # Fold the constant class-token contribution into the fc bias (f32).
    b_fc_eff = params["b_fc"].reshape(1, O) + cls @ w_fc_t[:D, :]        # [1, O]

    return {
        "w_patch": jnp.pad(params["w_patch"], ((0, Kp - K), (0, 0))
                           ).astype(jnp.bfloat16),                        # [Kp, D]
        "b_patch": params["b_patch"].reshape(1, D),                       # [1, D] f32
        "w_fc_p": jnp.pad(w_fc_t[D:, :], ((0, 0), (0, Op - O))
                          ).astype(jnp.bfloat16),                         # [D, Op]
        "b_fc_eff": jnp.pad(b_fc_eff, ((0, 0), (0, Op - O))),             # [1, Op] f32
        "k_orig": K, "k_pad": Kp, "o_orig": O, "o_pad": Op,
    }


# ---------------------------------------------------------------------------
# Forward pass (wrapper glue + the single fused Pallas kernel)
# ---------------------------------------------------------------------------
def virchow2_extended_forward(image, prep):
    B, C, H, W = image.shape
    Hp, Wp = H // PATCH, W // PATCH
    # Linearity of the synthetic backbone: mean over patch tokens BEFORE the
    # patch-embed matmul.  Done in f32 directly on the NCHW image (no [B,nP,K]
    # patch tensor is ever materialized); flatten in (c, ph, pw) order to match
    # the Conv2d-style patch-embed weight layout, then pad+cast in one step.
    p = image.reshape(B, C, Hp, PATCH, Wp, PATCH)
    xm = p.mean(axis=(2, 4)).reshape(B, C * PATCH * PATCH)               # [B, K] f32
    xm = jnp.pad(xm, ((0, 0), (0, prep["k_pad"] - prep["k_orig"]))
                 ).astype(jnp.bfloat16)                                  # [B, Kp] bf16

    out = fused_head(xm, prep["w_patch"], prep["b_patch"],
                     prep["w_fc_p"], prep["b_fc_eff"])                   # [B, Op] f32
    return out[:, :prep["o_orig"]]


# ---------------------------------------------------------------------------
def init_params(key, in_chans, output_dim):
    patch_dim = in_chans * PATCH * PATCH
    k = jax.random.split(key, 6)
    s = 0.02
    return {
        "w_patch": jax.random.normal(k[0], (patch_dim, D_EMBED), jnp.float32) * s,
        "b_patch": jnp.zeros((1, D_EMBED), jnp.float32),
        "cls_token": jax.random.normal(k[1], (1, 1, D_EMBED), jnp.float32) * s,
        "reg_tokens": jax.random.normal(k[2], (1, N_REG, D_EMBED), jnp.float32) * s,
        "w_fc": jax.random.normal(k[3], (output_dim, 2 * D_EMBED), jnp.float32) * s,
        "b_fc": jax.random.normal(k[4], (output_dim,), jnp.float32) * s,
    }


def reference_forward(image, params):
    # plain-JAX f32 reference (same math as the PyTorch module on the synthetic backbone)
    B, C, H, W = image.shape
    Hp, Wp = H // PATCH, W // PATCH
    p = image.reshape(B, C, Hp, PATCH, Wp, PATCH)
    p = p.transpose(0, 2, 4, 1, 3, 5).reshape(B, Hp * Wp, C * PATCH * PATCH)
    emb = p @ params["w_patch"] + params["b_patch"]
    cls = jnp.broadcast_to(params["cls_token"], (B, 1, D_EMBED))
    reg = jnp.broadcast_to(params["reg_tokens"], (B, N_REG, D_EMBED))
    tokens = jnp.concatenate([cls, reg, emb], axis=1)
    class_token = tokens[:, 0]
    patch_tokens = tokens[:, 5:]
    embedding = jnp.concatenate([class_token, patch_tokens.mean(1)], axis=-1)
    return embedding @ params["w_fc"].T + params["b_fc"]


if __name__ == "__main__":
    key = jax.random.PRNGKey(0)
    k_img, k_par = jax.random.split(key)

    B, C, H, W = 2, 3, 32, 32          # small image; 16 patch tokens per image
    output_dim = 16

    image = jax.random.normal(k_img, (B, C, H, W), jnp.float32)
    params = init_params(k_par, C, output_dim)
    prep = prepare_params(params)      # one-time weight transpose / split / pad / bf16

    out = virchow2_extended_forward(image, prep)
    out = jax.block_until_ready(out)
    assert out.shape == (B, output_dim), out.shape

    ref = reference_forward(image, params)
    # bf16 MXU operands with f32 accumulation -> relaxed tolerance vs f32 reference
    assert jnp.allclose(out, ref, rtol=5e-2, atol=1e-2), (
        float(jnp.max(jnp.abs(out - ref))))

    print("KERNEL_OK")
</pallas_src>

<mosaic_0001>
module attributes {stable_mosaic.version = 11 : i64} {
  func.func @_fused_kernel(%arg0: i32, %arg1: memref<8x256xbf16, #tpu.memory_space<vmem>>, %arg2: memref<256x1280xbf16, #tpu.memory_space<vmem>>, %arg3: memref<1x1280xf32, #tpu.memory_space<vmem>>, %arg4: memref<1280x128xbf16, #tpu.memory_space<vmem>>, %arg5: memref<1x128xf32, #tpu.memory_space<vmem>>, %arg6: memref<8x128xf32, #tpu.memory_space<vmem>>) attributes {dimension_semantics = [#tpu.dimension_semantics<parallel>], iteration_bounds = array<i64: 2>, scalar_prefetch = 0 : i64, scratch_operands = 0 : i64, tpu.core_type = #tpu.core_type<tc>, window_params = [{transform_indices = @transform_0, window_bounds = array<i64: 8, 256>}, {pipeline_mode = #tpu.pipeline_mode<synchronous>, transform_indices = @transform_1, window_bounds = array<i64: 256, 1280>}, {pipeline_mode = #tpu.pipeline_mode<synchronous>, transform_indices = @transform_2, window_bounds = array<i64: 1, 1280>}, {pipeline_mode = #tpu.pipeline_mode<synchronous>, transform_indices = @transform_3, window_bounds = array<i64: 1280, 128>}, {pipeline_mode = #tpu.pipeline_mode<synchronous>, transform_indices = @transform_4, window_bounds = array<i64: 1, 128>}, {transform_indices = @transform_5, window_bounds = array<i64: 8, 128>}]} {
    %c0 = arith.constant 0 : index
    %c0_0 = arith.constant 0 : index
    %0 = vector.load %arg1[%c0, %c0_0] : memref<8x256xbf16, #tpu.memory_space<vmem>>, vector<8x256xbf16>
    %c0_1 = arith.constant 0 : index
    %c0_2 = arith.constant 0 : index
    %1 = vector.load %arg2[%c0_1, %c0_2] : memref<256x1280xbf16, #tpu.memory_space<vmem>>, vector<256x1280xbf16>
    %cst = arith.constant dense<0.000000e+00> : vector<8x1280xf32>
    %2 = tpu.matmul %0, %1, %cst {dimension_numbers = #tpu.dot_dimension_numbers<[1], [0], [0], [1], [0, 0, 1, 1], [], []>} : vector<8x256xbf16>, vector<256x1280xbf16>, vector<8x1280xf32> -> vector<8x1280xf32>
    %c0_3 = arith.constant 0 : index
    %c0_4 = arith.constant 0 : index
    %3 = vector.load %arg3[%c0_3, %c0_4] : memref<1x1280xf32, #tpu.memory_space<vmem>>, vector<1x1280xf32>
    %4 = vector.broadcast %3 : vector<1x1280xf32> to vector<8x1280xf32>
    %5 = arith.addf %2, %4 : vector<8x1280xf32>
    %6 = arith.truncf %5 : vector<8x1280xf32> to vector<8x1280xbf16>
    %c0_5 = arith.constant 0 : index
    %c0_6 = arith.constant 0 : index
    %7 = vector.load %arg4[%c0_5, %c0_6] : memref<1280x128xbf16, #tpu.memory_space<vmem>>, vector<1280x128xbf16>
    %cst_7 = arith.constant dense<0.000000e+00> : vector<8x128xf32>
    %8 = tpu.matmul %6, %7, %cst_7 {dimension_numbers = #tpu.dot_dimension_numbers<[1], [0], [0], [1], [0, 0, 1, 1], [], []>} : vector<8x1280xbf16>, vector<1280x128xbf16>, vector<8x128xf32> -> vector<8x128xf32>
    %c0_8 = arith.constant 0 : index
    %c0_9 = arith.constant 0 : index
    %9 = vector.load %arg5[%c0_8, %c0_9] : memref<1x128xf32, #tpu.memory_space<vmem>>, vector<1x128xf32>
    %10 = vector.broadcast %9 : vector<1x128xf32> to vector<8x128xf32>
    %11 = arith.addf %8, %10 : vector<8x128xf32>
    %c0_10 = arith.constant 0 : index
    %c0_11 = arith.constant 0 : index
    %12 = vector.load %arg6[%c0_10, %c0_11] : memref<8x128xf32, #tpu.memory_space<vmem>>, vector<8x128xf32>
    tpu.vector_store %arg6[%c0_10, %c0_11], %11 {strides = array<i32>} : memref<8x128xf32, #tpu.memory_space<vmem>>, vector<8x128xf32>,
    return
  }
  func.func @transform_0(%arg0: i32) -> (i32, i32) {
    %c0_i32 = arith.constant 0 : i32
    %c0_i32_0 = arith.constant 0 : i32
    return %arg0, %c0_i32 : i32, i32
  }
  func.func @transform_1(%arg0: i32) -> (i32, i32) {
    %c0_i32 = arith.constant 0 : i32
    %c0_i32_0 = arith.constant 0 : i32
    %c0_i32_1 = arith.constant 0 : i32
    return %c0_i32, %c0_i32_0 : i32, i32
  }
  func.func @transform_2(%arg0: i32) -> (i32, i32) {
    %c0_i32 = arith.constant 0 : i32
    %c0_i32_0 = arith.constant 0 : i32
    %c0_i32_1 = arith.constant 0 : i32
    return %c0_i32, %c0_i32_0 : i32, i32
  }
  func.func @transform_3(%arg0: i32) -> (i32, i32) {
    %c0_i32 = arith.constant 0 : i32
    %c0_i32_0 = arith.constant 0 : i32
    %c0_i32_1 = arith.constant 0 : i32
    return %c0_i32, %c0_i32_0 : i32, i32
  }
  func.func @transform_4(%arg0: i32) -> (i32, i32) {
    %c0_i32 = arith.constant 0 : i32
    %c0_i32_0 = arith.constant 0 : i32
    %c0_i32_1 = arith.constant 0 : i32
    return %c0_i32, %c0_i32_0 : i32, i32
  }
  func.func @transform_5(%arg0: i32) -> (i32, i32) {
    %c0_i32 = arith.constant 0 : i32
    %c0_i32_0 = arith.constant 0 : i32
    return %arg0, %c0_i32 : i32, i32
  }
}

</mosaic_0001>

<bundles_post_ra>
// kernel: tpu_custom_call.1
= control target key start
LH: loop header
LB: loop body
LE: loop exit
PB: predicated region body
PF: predicated region fallthrough
CT: control target
= control target key end

     0   :  { %10 = vsyncpa [#allocation3], 0  ;;  %s3793_s0 = inlined_call_operand.hbm [shape: bf16[16,256], index: 0, kind: input, shape index: {}]   ;;  %s3794_s1 = inlined_call_operand.hbm [shape: bf16[256,1280], index: 1, kind: input, shape index: {}]   ;;  %s3795_s2 = inlined_call_operand.hbm [shape: f32[1,1280], index: 2, kind: input, shape index: {}]   ;;  %s3796_s3 = inlined_call_operand.hbm [shape: bf16[1280,128], index: 3, kind: input, shape index: {}]   ;;  %s3797_s4 = inlined_call_operand.vmem [shape: f32[1,128], index: 4, kind: input, shape index: {}]   ;;  %s3798_s5 = inlined_call_operand.hbm [shape: f32[16,128], index: 5, kind: output, shape index: {}]  }
   0x1   :  { %12 = vsyncpa [#allocation3 + $0x1], 0 }
   0x2   :  { %13 = vsyncpa [#allocation6], 0 }
   0x3   :  { %14 = vsyncpa [#allocation9], 0 }
   0x4   :  { %15 = vsyncpa [#allocation4], 0 }
   0x5   :  { %17 = vsyncpa [#allocation4 + $0x1], 0  ;;  %s3487_s18 = smov 0   ;;  %s3489_s19 = smov 0  }
   0x6   :  { %s3491_s20 = smov 0   ;;  %s3493_s21 = smov 0  }
   0x7 LB: > { %s3508_s22 = sadd.s32 4294967295, %s3446_s21   ;;  %s2482_s23 = sadd.s32 4294967294, %s3446_s21   ;;  %s3446_s21 = sphi %s3493_s21, %s3821_s21   ;;  %s3442_s20 = sphi %s3491_s20, %s3820_s20   ;;  %s3438_s19 = sphi %s3489_s19, %s3819_s19   ;;  %s3434_s18 = sphi %s3487_s18, %s3818_s18  }
   0x8   : > { %p43_p0 = scmp.ne.s32.totalorder %s3438_s19, %s3434_s18  ;;  %p3799_p1 = scmp.eq.s32.totalorder %s3508_s22, 0 }
   0x9   : > { %p157_p3 = scmp.eq.s32.totalorder %s2482_s23, 1  ;;  %p2483_p5 = scmp.ge.s32.totalorder %s3446_s21, 1 }
   0xa   : > { %p3517_p4 = por %p3799_p1, %p43_p0  ;;  %p164_p7 = scmp.lt.s32.totalorder %s3446_s21, 3 }
   0xb   : > { %p3522_p6 = por %p157_p3, %p43_p0  ;;  %s3448_s27 = smov [#allocation5]  }
   0xc   : > { %s3802_s24 = scalar_select %p3517_p4, 1, 0 }
   0xd   : > { %s3803_s25 = scalar_select %p3522_p6, 1, 0 }
   0xe   : > { %p3527_p8 = pnand %p2483_p5, %p164_p7  ;;  %s176_s28 = sshll.u32 %s3448_s27, 4  ;;  %s3531_s28 = int_to_ptr.vmem [resolvable:$true] %s176_s28 }
   0xf   : > { %s3449_s30 = smov [#allocation7]   ;;  %s3450_s7 = smov [#allocation8]  }
  0x10   : > { %s3804_s26 = scalar_select %p3527_p8, 1, 0 }
  0x11   : > { %p2871_p9 = pneg %p3527_p8  ;;  %s190_s6 = sshll.u32 %s3449_s30, 4  ;;  %s3542_s6 = int_to_ptr.vmem [resolvable:$true] %s190_s6 }
  0x12   : > { %s3544_s8 = sshll.u32 %s3450_s7, 4  ;;  %s3258_s11 = scalar_lea.hbm %s3794_s1, 20480  ;;  %s201_s8 = int_to_ptr.vmem [resolvable:$true] %s3544_s8 }
  0x13   : > { %p3538_p11 = pnand %p2871_p9, %p3799_p1  ;;  %p3259_p12 = scmp.ne.s32.totalorder %s3794_s1, %s3258_s11 }
  0x14   : > { %p3265_p5 = scmp.lt.u32.totalorder %s3258_s11, %s3794_s1 }
  0x15   : > { %p3554_p13 = pneg %p3538_p11 }
  0x17   : > { %p3261_p0 = pnand %p3554_p13, %p3259_p12 }
  0x19   : > { %p3262_p3 = pneg %p3261_p0 }
  0x1b   : > { %p3267_p7 = pnand %p3265_p5, %p3262_p3 }
  0x1d   : > { %3270 = shalt.err (!%p3267_p7)
}
  0x1e   : > { %s3271_s17 = scalar_lea.vmem %s3531_s28, 20480  ;;  %p3279_p2 = scmp.lt.s32.totalorder %s3531_s28, %s3531_s28 }
  0x1f   : > { %p3272_p9 = scmp.ne.s32.totalorder %s3531_s28, %s3271_s17  ;;  %p3280_p6 = scmp.lt.s32.totalorder %s3271_s17, %s3271_s17 }
  0x21   : > { %p3274_p10 = pnand %p3272_p9, %p3554_p13  ;;  %p3281_p12 = por %p3280_p6, %p3279_p2 }
  0x23   : > { %p3275_p1 = pneg %p3274_p10 }
  0x25   : > { %p3282_p0 = pnand %p3281_p12, %p3275_p1 }
  0x27   : > { %3285 = shalt.err (!%p3282_p0)
}
  0x28   : > { %s3451_s23 = smov 640   ;;  %s3452_s27 = smov 40  }
  0x29   : > { %2874 = dma.hbm_to_vmem [thread:$0]  (!%p3538_p11), %s3794_s1, 20480, %s3531_s28, [#allocation6], %s3451_s23, %s3451_s23, %s3452_s27  }
  0x2a   : > { %s3286_s11 = scalar_lea.hbm %s3795_s2, 160 }
  0x2b   : > { %p3287_p2 = scmp.ne.s32.totalorder %s3795_s2, %s3286_s11  ;;  %p3293_p10 = scmp.lt.u32.totalorder %s3286_s11, %s3795_s2 }
  0x2d   : > { %p3289_p1 = pnand %p3287_p2, %p3554_p13 }
  0x2f   : > { %p3290_p6 = pneg %p3289_p1 }
  0x31   : > { %p3295_p3 = pnand %p3293_p10, %p3290_p6 }
  0x33   : > { %3298 = shalt.err (!%p3295_p3)
}
  0x34   : > { %s3299_s28 = scalar_lea.vmem %s3542_s6, 160  ;;  %p3307_p12 = scmp.lt.s32.totalorder %s3542_s6, %s3542_s6 }
  0x35   : > { %p3300_p5 = scmp.ne.s32.totalorder %s3542_s6, %s3299_s28  ;;  %p3308_p0 = scmp.lt.s32.totalorder %s3299_s28, %s3299_s28 }
  0x37   : > { %p3302_p7 = pnand %p3300_p5, %p3554_p13  ;;  %p3309_p2 = por %p3308_p0, %p3307_p12 }
  0x39   : > { %p3303_p9 = pneg %p3302_p7 }
  0x3b   : > { %p3310_p1 = pnand %p3309_p2, %p3303_p9 }
  0x3d   : > { %3313 = shalt.err (!%p3310_p1)
}
  0x3e   : > { %2877 = dma.hbm_to_vmem [thread:$0]  (!%p3538_p11), %s3795_s2, 160, %s3542_s6, [#allocation6]  }
  0x3f   : > { %s3314_s7 = scalar_lea.hbm %s3796_s3, 10240 }
  0x40   : > { %p3315_p6 = scmp.ne.s32.totalorder %s3796_s3, %s3314_s7  ;;  %p3321_p5 = scmp.lt.u32.totalorder %s3314_s7, %s3796_s3 }
  0x42   : > { %p3317_p10 = pnand %p3315_p6, %p3554_p13 }
  0x44   : > { %p3318_p3 = pneg %p3317_p10 }
  0x46   : > { %p3323_p7 = pnand %p3321_p5, %p3318_p3 }
  0x48   : > { %3326 = shalt.err (!%p3323_p7)
}
  0x49   : > { %s3327_s13 = scalar_lea.vmem %s201_s8, 10240  ;;  %p3335_p2 = scmp.lt.s32.totalorder %s201_s8, %s201_s8 }
  0x4a   : > { %p3328_p9 = scmp.ne.s32.totalorder %s201_s8, %s3327_s13  ;;  %p3336_p1 = scmp.lt.s32.totalorder %s3327_s13, %s3327_s13 }
  0x4c   : > { %p3330_p12 = pnand %p3328_p9, %p3554_p13  ;;  %p3337_p4 = por %p3336_p1, %p3335_p2 }
  0x4e   : > { %p3331_p0 = pneg %p3330_p12 }
  0x50   : > { %p3338_p8 = pnand %p3337_p4, %p3331_p0 }
  0x52   : > { %3341 = shalt.err (!%p3338_p8)
}
  0x53   : > { %s3453_s6 = smov 64   ;;  %s3454_s14 = smov 4  }
  0x54   : > { %2880 = dma.hbm_to_vmem [thread:$0]  (!%p3538_p11), %s3796_s3, 10240, %s201_s8, [#allocation9], %s3453_s6, %s3453_s6, %s3454_s14  }
  0x55   : > { %s3618_s28 = sadd.s32 1, %s3446_s21   ;;  %s30_s23 = sadd.s32 1, %s3442_s20 }
  0x56   : > { %s27_s17 = ssub.s32 %s3446_s21, %s3618_s28  ;;  %p37_p8 = scmp.ne.s32.totalorder %s3442_s20, %s3438_s19 }
  0x57   : > { %p28_p4 = scmp.eq.s32.totalorder %s27_s17, 0  ;;  %p38_p13 = scmp.eq.s32.totalorder %s3446_s21, 0 }
  0x58   : > { %p2892_p6 = scmp.lt.s32.totalorder %s3446_s21, 2  ;;  %p3807_p3 = scmp.eq.s32.totalorder %s3508_s22, 1 }
  0x59   : > { %s3628_s27 = scalar_select %p28_p4, %s3442_s20, %s30_s23  }
  0x5a   : > { %p39_p10 = por %p38_p13, %p37_p8  ;;  %p3632_p5 = por %p3807_p3, %p37_p8 }
  0x5b   : > { %s217_s29 = sand.u32 1, %s3442_s20   ;;  %s2744_s7 = sshll.u32 %s3446_s21, 7 }
  0x5c   : > { %s2488_s8 = sshll.u32 %s217_s29, 3  ;;  %s3641_s11 = scalar_lea.hbm %s3793_s0, %s2744_s7 }
  0x5d   : > { %s221_s12 = scalar_lea.vmem [#allocation2], %s2488_s8  ;;  %p3643_p11 = pnand %p2892_p6, %p39_p10 }
  0x5e   : > { %s229_s13 = sshll.u32 %s221_s12, 4  ;;  %s218_s14 = scalar_lea.sflag [#allocation3], %s217_s29  ;;  %s3647_s13 = int_to_ptr.vmem [resolvable:$true] %s229_s13 }
  0x5f   : > { %s3342_s15 = scalar_lea.hbm %s3641_s11, 128  ;;  %p3344_p9 = pneg %p3643_p11 }
  0x60   : > { %p3343_p7 = scmp.ne.s32.totalorder %s3641_s11, %s3342_s15  ;;  %s3347_s23 = scalar_lea.hbm %s3793_s0, 256 }
  0x61   : > { %p3348_p2 = scmp.lt.u32.totalorder %s3641_s11, %s3793_s0  ;;  %p3349_p1 = scmp.lt.u32.totalorder %s3347_s23, %s3342_s15 }
  0x62   : > { %p3345_p12 = pnand %p3344_p9, %p3343_p7  ;;  %p3351_p8 = scmp.lt.u32.totalorder %s3342_s15, %s3641_s11 }
  0x63   : > { %p3350_p4 = por %p3349_p1, %p3348_p2 }
  0x64   : > { %p3346_p0 = pneg %p3345_p12 }
  0x65   : > { %p3352_p13 = por %p3351_p8, %p3350_p4 }
  0x67   : > { %p3353_p6 = pnand %p3352_p13, %p3346_p0 }
  0x69   : > { %3356 = shalt.err (!%p3353_p6)
}
  0x6a   : > { %s3357_s29 = scalar_lea.vmem %s3647_s13, 128  ;;  %s3455_s9 = smov [#allocation2]  }
  0x6b   : > { %p3358_p10 = scmp.ne.s32.totalorder %s3647_s13, %s3357_s29  ;;  %s3362_s10 = sshll.u32 %s3455_s9, 4  ;;  %s3363_s10 = int_to_ptr.vmem [resolvable:$false] %s3362_s10 }
  0x6c   : > { %s3364_s12 = scalar_lea.vmem %s3363_s10, 256  ;;  %p3365_p12 = scmp.lt.s32.totalorder %s3647_s13, %s3363_s10 }
  0x6d   : > { %p3360_p3 = pnand %p3358_p10, %p3344_p9  ;;  %p3366_p2 = scmp.lt.s32.totalorder %s3364_s12, %s3357_s29 }
  0x6f   : > { %p3361_p7 = pneg %p3360_p3  ;;  %p3367_p1 = por %p3366_p2, %p3365_p12 }
  0x71   : > { %p3368_p4 = pnand %p3367_p1, %p3361_p7 }
  0x73   : > { %3371 = shalt.err (!%p3368_p4)
}
  0x74   : > { %2884 = dma.hbm_to_vmem [thread:$0]  (!%p3643_p11), %s3641_s11, 128, %s3647_s13, %s218_s14  }
  0x75   : > { %p3810_p0 = scmp.ne.s32.totalorder %s3804_s26, 0 }
  0x76   : > { %s3677_s15 = sand.u32 (!%p3810_p0), 1, %s3438_s19   ;;  %p3811_p9 = scmp.ne.s32.totalorder (!%p3810_p0), %s3802_s24, 0 }
  0x77   : > { %238 = sbr.rel (%p3810_p0) target bundleno = 776 (0x308), region = 40  ;;  %s2492_s16 = sshll.u32 (!%p3810_p0), %s3677_s15, 3 }
  0x78   : > { %s241_s17 = scalar_lea.sflag (!%p3810_p0), [#allocation3], %s3677_s15  ;;  %s3683_s23 = scalar_lea.vmem (!%p3810_p0), [#allocation2], %s2492_s16 }
  0x7e   : > { %3417 = dma.done.wait (%p3811_p9), %s241_s17, 128  }
  0x7f   : > { %3419 = vsyncadd (%p3811_p9), %s241_s17, 4294967168  ;;  %p3812_p11 = scmp.eq.s32.totalorder %s3508_s22, 0 }
  0x81   : > { %3421 = dma.done.wait (%p3812_p11), [#allocation6], 20640   ;;  %p3813_p8 = pmov %p3812_p11 }
  0x83   : > { %3423 = vsyncadd (%p3813_p8), [#allocation6], 4294946656  ;;  %p3814_p13 = pmov %p3813_p8 }
  0x84   : > { %p3815_p6 = pmov %p3813_p8 }
  0x85   : > { %3425 = dma.done.wait (%p3814_p13), [#allocation9], 10240  }
  0x86   : > { %3427 = vsyncadd (%p3815_p6), [#allocation9], 4294957056  ;;  %v2936_v0 = vld [vmem:[#allocation5 + $0x4] ss:$40 sps:$4 sm:$0xff]   ;;  %v2938_v1 = vld [vmem:[#allocation5] ss:$40 sps:$4 sm:$0xff]  }
  0x87   : > { %1306 = vmatprep.subr.bf16.mxu0 %v2936_v0  ;;  %v2939_v2 = vld [vmem:[#allocation5 + $0xc] ss:$40 sps:$4 sm:$0xff]   ;;  %v2941_v3 = vld [vmem:[#allocation5 + $0x8] ss:$40 sps:$4 sm:$0xff]   ;;  %v2945_v6 = vld [vmem:[#allocation5 + $0x5c] ss:$40 sps:$4 sm:$0xff]  }
  0x88   : > { %1307 = vmatpush1.bf16.msra.mxu0 %v2938_v1  ;;  %v2942_v4 = vld [vmem:[#allocation5 + $0x54] ss:$40 sps:$4 sm:$0xff]   ;;  %v2944_v5 = vld [vmem:[#allocation5 + $0x50] ss:$40 sps:$4 sm:$0xff]   ;;  %1347 = vmatprep.subr.bf16.mxu1 %v2939_v2  ;;  %v2948_v8 = vld [vmem:[#allocation5 + $0xa4] ss:$40 sps:$4 sm:$0xff]  }
  0x89   : > { %1348 = vmatpush1.bf16.msra.mxu1 %v2941_v3  ;;  %1308 = vmatprep.subr.bf16.mxu0 %v2942_v4  ;;  %v2947_v7 = vld [vmem:[#allocation5 + $0x58] ss:$40 sps:$4 sm:$0xff]   ;;  %v2951_v10 = vld [vmem:[#allocation5 + $0xac] ss:$40 sps:$4 sm:$0xff]   ;;  %v2953_v12 = vld [vmem:[#allocation5 + $0xa8] ss:$40 sps:$4 sm:$0xff]  }
  0x8a   : > { %1349 = vmatprep.subr.bf16.mxu1 %v2945_v6  ;;  %v2950_v9 = vld [vmem:[#allocation5 + $0xa0] ss:$40 sps:$4 sm:$0xff]   ;;  %v2954_v11 = vld [vmem:[#allocation5 + $0xf4] ss:$40 sps:$4 sm:$0xff]   ;;  %v2956_v14 = vld [vmem:[#allocation5 + $0xf0] ss:$40 sps:$4 sm:$0xff]  }
  0x8b   : > { %v2957_v13 = vld [vmem:[#allocation5 + $0xfc] ss:$40 sps:$4 sm:$0xff]   ;;  %v2959_v16 = vld [vmem:[#allocation5 + $0xf8] ss:$40 sps:$4 sm:$0xff]   ;;  %v2963_v17 = vld [vmem:[#allocation5 + $0x14c] ss:$40 sps:$4 sm:$0xff]  }
  0x8c   : > { %1309 = vmatpush1.bf16.msra.mxu0 %v2944_v5  ;;  %v2960_v15 = vld [vmem:[#allocation5 + $0x144] ss:$40 sps:$4 sm:$0xff]   ;;  %v2962_v18 = vld [vmem:[#allocation5 + $0x140] ss:$40 sps:$4 sm:$0xff]   ;;  %v2966_v19 = vld [vmem:[#allocation5 + $0x194] ss:$40 sps:$4 sm:$0xff]  }
  0x8d   : > { %1310 = vmatprep.subr.bf16.mxu0 %v2948_v8  ;;  %1350 = vmatpush1.bf16.msra.mxu1 %v2947_v7  ;;  %v2965_v20 = vld [vmem:[#allocation5 + $0x148] ss:$40 sps:$4 sm:$0xff]   ;;  %v2969_v21 = vld [vmem:[#allocation5 + $0x19c] ss:$40 sps:$4 sm:$0xff]   ;;  %v2971_v24 = vld [vmem:[#allocation5 + $0x198] ss:$40 sps:$4 sm:$0xff]  }
  0x8e   : > { %1351 = vmatprep.subr.bf16.mxu1 %v2951_v10  ;;  %v2968_v22 = vld [vmem:[#allocation5 + $0x190] ss:$40 sps:$4 sm:$0xff]   ;;  %v2972_v23 = vld [vmem:[#allocation5 + $0x1e4] ss:$40 sps:$4 sm:$0xff]   ;;  %v2974_v26 = vld [vmem:[#allocation5 + $0x1e0] ss:$40 sps:$4 sm:$0xff]  }
  0x8f   : > { %v2975_v25 = vld [vmem:[#allocation5 + $0x1ec] ss:$40 sps:$4 sm:$0xff]   ;;  %v2977_v28 = vld [vmem:[#allocation5 + $0x1e8] ss:$40 sps:$4 sm:$0xff]   ;;  %v2981_v29 = vld [vmem:[#allocation5 + $0x23c] ss:$40 sps:$4 sm:$0xff]  }
  0x90   : > { %1311 = vmatpush1.bf16.msra.mxu0 %v2950_v9  ;;  %v2978_v27 = vld [vmem:[#allocation5 + $0x234] ss:$40 sps:$4 sm:$0xff]   ;;  %v2980_v30 = vld [vmem:[#allocation5 + $0x230] ss:$40 sps:$4 sm:$0xff]   ;;  %v2984_v31 = vld [vmem:[#allocation5 + $0x284] ss:$40 sps:$4 sm:$0xff]  }
  0x91   : > { %1312 = vmatprep.subr.bf16.mxu0 %v2954_v11  ;;  %1352 = vmatpush1.bf16.msra.mxu1 %v2953_v12  ;;  %v2983_v32 = vld [vmem:[#allocation5 + $0x238] ss:$40 sps:$4 sm:$0xff]   ;;  %v2987_v33 = vld [vmem:[#allocation5 + $0x28c] ss:$40 sps:$4 sm:$0xff]   ;;  %v2989_v36 = vld [vmem:[#allocation5 + $0x288] ss:$40 sps:$4 sm:$0xff]  }
  0x92   : > { %1353 = vmatprep.subr.bf16.mxu1 %v2957_v13  ;;  %v2986_v34 = vld [vmem:[#allocation5 + $0x280] ss:$40 sps:$4 sm:$0xff]   ;;  %v2990_v35 = vld [vmem:[#allocation5 + $0x2d4] ss:$40 sps:$4 sm:$0xff]   ;;  %v2992_v38 = vld [vmem:[#allocation5 + $0x2d0] ss:$40 sps:$4 sm:$0xff]  }
  0x93   : > { %v2993_v37 = vld [vmem:[#allocation5 + $0x2dc] ss:$40 sps:$4 sm:$0xff]   ;;  %v2995_v40 = vld [vmem:[#allocation5 + $0x2d8] ss:$40 sps:$4 sm:$0xff]   ;;  %v2999_v41 = vld [vmem:[#allocation5 + $0x32c] ss:$40 sps:$4 sm:$0xff]  }
  0x94   : > { %1313 = vmatpush1.bf16.msra.mxu0 %v2956_v14  ;;  %v2996_v39 = vld [vmem:[#allocation5 + $0x324] ss:$40 sps:$4 sm:$0xff]   ;;  %v2998_v42 = vld [vmem:[#allocation5 + $0x320] ss:$40 sps:$4 sm:$0xff]   ;;  %v3002_v43 = vld [vmem:[#allocation5 + $0x374] ss:$40 sps:$4 sm:$0xff]  }
  0x95   : > { %1314 = vmatprep.subr.bf16.mxu0 %v2960_v15  ;;  %1354 = vmatpush1.bf16.msra.mxu1 %v2959_v16  ;;  %v3001_v44 = vld [vmem:[#allocation5 + $0x328] ss:$40 sps:$4 sm:$0xff]   ;;  %v3005_v45 = vld [vmem:[#allocation5 + $0x37c] ss:$40 sps:$4 sm:$0xff]   ;;  %v3007_v50 = vld [vmem:[#allocation5 + $0x378] ss:$40 sps:$4 sm:$0xff]  }
  0x96   : > { %1355 = vmatprep.subr.bf16.mxu1 %v2963_v17  ;;  %v284_v46 = vld [vmem:[%s3683_s23] sm:$0xff]  ;;  %v3008_v49 = vld [vmem:[#allocation5 + $0x3c4] ss:$40 sps:$4 sm:$0xff]   ;;  %v3010_v52 = vld [vmem:[#allocation5 + $0x3c0] ss:$40 sps:$4 sm:$0xff]   ;;  %s2741_s11 = sshll.u32 %s3508_s22, 7 }
  0x97   : > { %v3004_v47 = vld [vmem:[#allocation5 + $0x370] ss:$40 sps:$4 sm:$0xff]   ;;  %v3698_v48 = vcombine.high %v284_v46, %v284_v46  ;;  %v3011_v51 = vld [vmem:[#allocation5 + $0x3cc] ss:$40 sps:$4 sm:$0xff]   ;;  %v3017_v55 = vld [vmem:[#allocation5 + $0x41c] ss:$40 sps:$4 sm:$0xff]   ;;  %v3702_v3 = vcombine.low %v284_v46, %v284_v46  ;;  %s3749_s8 = scalar_lea.hbm %s3798_s5, %s2741_s11 }
  0x98   : > { %1315 = vmatpush1.bf16.msra.mxu0 %v2962_v18  ;;  %v3014_v53 = vld [vmem:[#allocation5 + $0x414] ss:$40 sps:$4 sm:$0xff]   ;;  %v3013_v54 = vld [vmem:[#allocation5 + $0x3c8] ss:$40 sps:$4 sm:$0xff]   ;;  %v3020_v57 = vld [vmem:[#allocation5 + $0x464] ss:$40 sps:$4 sm:$0xff]  }
  0x99   : > { %1316 = vmatprep.subr.bf16.mxu0 %v2966_v19  ;;  %1356 = vmatpush1.bf16.msra.mxu1 %v2965_v20  ;;  %v3016_v56 = vld [vmem:[#allocation5 + $0x410] ss:$40 sps:$4 sm:$0xff]   ;;  %v3023_v59 = vld [vmem:[#allocation5 + $0x46c] ss:$40 sps:$4 sm:$0xff]   ;;  %v3022_v60 = vld [vmem:[#allocation5 + $0x460] ss:$40 sps:$4 sm:$0xff]  }
  0x9a   : > { %1357 = vmatprep.subr.bf16.mxu1 %v2969_v21  ;;  %1338 = vmatprep.mubr.bf16.mxu0 %v3698_v48  ;;  %v3019_v58 = vld [vmem:[#allocation5 + $0x418] ss:$40 sps:$4 sm:$0xff]   ;;  %v3026_v61 = vld [vmem:[#allocation5 + $0x4b4] ss:$40 sps:$4 sm:$0xff]   ;;  %v3025_v62 = vld [vmem:[#allocation5 + $0x468] ss:$40 sps:$4 sm:$0xff]  }
  0x9b   : > { %1379 = vmatprep.mubr.bf16.mxu1 %v3698_v48  ;;  %v3029_v63 = vld [vmem:[#allocation5 + $0x4bc] ss:$40 sps:$4 sm:$0xff]   ;;  %v3028_v0 = vld [vmem:[#allocation5 + $0x4b0] ss:$40 sps:$4 sm:$0xff]   ;;  %v3045_v8 = vld [vmem:[#allocation5 + $0x6c] ss:$40 sps:$4 sm:$0xff]  }
  0x9c   : > { %1317 = vmatpush1.bf16.msra.mxu0 %v2968_v22  ;;  %v3036_v1 = vld [vmem:[#allocation5 + $0x14] ss:$40 sps:$4 sm:$0xff]   ;;  %v3032_v2 = vld [vmem:[#allocation5 + $0x4b8] ss:$40 sps:$4 sm:$0xff]   ;;  %v3042_v6 = vld [vmem:[#allocation5 + $0x64] ss:$40 sps:$4 sm:$0xff]  }
  0x9d   : > { %1318 = vmatprep.subr.bf16.mxu0 %v2972_v23  ;;  %1358 = vmatpush1.bf16.msra.mxu1 %v2971_v24  ;;  %v3039_v4 = vld [vmem:[#allocation5 + $0x1c] ss:$40 sps:$4 sm:$0xff]   ;;  %v3034_v5 = vld [vmem:[#allocation5 + $0x10] ss:$40 sps:$4 sm:$0xff]   ;;  %v3040_v9 = vld [vmem:[#allocation5 + $0x60] ss:$40 sps:$4 sm:$0xff]  }
  0x9e   : > { %1359 = vmatprep.subr.bf16.mxu1 %v2975_v25  ;;  %v3037_v7 = vld [vmem:[#allocation5 + $0x18] ss:$40 sps:$4 sm:$0xff]   ;;  %v3048_v10 = vld [vmem:[#allocation5 + $0xb4] ss:$40 sps:$4 sm:$0xff]   ;;  %v3043_v11 = vld [vmem:[#allocation5 + $0x68] ss:$40 sps:$4 sm:$0xff]  }
  0x9f   : > { %v3051_v12 = vld [vmem:[#allocation5 + $0xbc] ss:$40 sps:$4 sm:$0xff]   ;;  %v3046_v13 = vld [vmem:[#allocation5 + $0xb0] ss:$40 sps:$4 sm:$0xff]   ;;  %v3057_v16 = vld [vmem:[#allocation5 + $0x10c] ss:$40 sps:$4 sm:$0xff]  }
  0xa0   : > { %1319 = vmatpush1.bf16.msra.mxu0 %v2974_v26  ;;  %v3054_v14 = vld [vmem:[#allocation5 + $0x104] ss:$40 sps:$4 sm:$0xff]   ;;  %v3049_v15 = vld [vmem:[#allocation5 + $0xb8] ss:$40 sps:$4 sm:$0xff]   ;;  %v3060_v18 = vld [vmem:[#allocation5 + $0x154] ss:$40 sps:$4 sm:$0xff]  }
  0xa1   : > { %1320 = vmatprep.subr.bf16.mxu0 %v2978_v27  ;;  %1360 = vmatpush1.bf16.msra.mxu1 %v2977_v28  ;;  %v3052_v17 = vld [vmem:[#allocation5 + $0x100] ss:$40 sps:$4 sm:$0xff]   ;;  %v3063_v20 = vld [vmem:[#allocation5 + $0x15c] ss:$40 sps:$4 sm:$0xff]   ;;  %v3058_v21 = vld [vmem:[#allocation5 + $0x150] ss:$40 sps:$4 sm:$0xff]  }
  0xa2   : > { %1361 = vmatprep.subr.bf16.mxu1 %v2981_v29  ;;  %v3055_v19 = vld [vmem:[#allocation5 + $0x108] ss:$40 sps:$4 sm:$0xff]   ;;  %v3066_v22 = vld [vmem:[#allocation5 + $0x1a4] ss:$40 sps:$4 sm:$0xff]   ;;  %v3061_v23 = vld [vmem:[#allocation5 + $0x158] ss:$40 sps:$4 sm:$0xff]  }
  0xa3   : > { %v3069_v24 = vld [vmem:[#allocation5 + $0x1ac] ss:$40 sps:$4 sm:$0xff]   ;;  %v3064_v25 = vld [vmem:[#allocation5 + $0x1a0] ss:$40 sps:$4 sm:$0xff]   ;;  %v3075_v28 = vld [vmem:[#allocation5 + $0x1fc] ss:$40 sps:$4 sm:$0xff]  }
  0xa4   : > { %1321 = vmatpush1.bf16.msra.mxu0 %v2980_v30  ;;  %v3072_v26 = vld [vmem:[#allocation5 + $0x1f4] ss:$40 sps:$4 sm:$0xff]   ;;  %v3067_v27 = vld [vmem:[#allocation5 + $0x1a8] ss:$40 sps:$4 sm:$0xff]   ;;  %v3078_v30 = vld [vmem:[#allocation5 + $0x244] ss:$40 sps:$4 sm:$0xff]  }
  0xa5   : > { %1322 = vmatprep.subr.bf16.mxu0 %v2984_v31  ;;  %1362 = vmatpush1.bf16.msra.mxu1 %v2983_v32  ;;  %v3070_v29 = vld [vmem:[#allocation5 + $0x1f0] ss:$40 sps:$4 sm:$0xff]   ;;  %v3081_v32 = vld [vmem:[#allocation5 + $0x24c] ss:$40 sps:$4 sm:$0xff]   ;;  %s282_s13 = scalar_lea.vmem [#allocation10], %s2492_s16  ;;  %s2370_s29 = scalar_lea.sflag [#allocation4], %s3677_s15 }
  0xa6   : > { %1363 = vmatprep.subr.bf16.mxu1 %v2987_v33  ;;  %v3073_v31 = vld [vmem:[#allocation5 + $0x1f8] ss:$40 sps:$4 sm:$0xff]   ;;  %v3102_v46 = vld [vmem:[#allocation5 + $0x384] ss:$40 sps:$4 sm:$0xff]   ;;  %s2383_s6 = sshll.u32 %s282_s13, 4  ;;  %s3456_s9 = smov [#allocation10]   ;;  %s3751_s6 = int_to_ptr.vmem [resolvable:$true] %s2383_s6 }
  0xa7   : > { %v3076_v33 = vld [vmem:[#allocation5 + $0x240] ss:$40 sps:$4 sm:$0xff]   ;;  %s3372_s22 = scalar_lea.vmem %s3751_s6, 128  ;;  %s3376_s10 = sshll.u32 %s3456_s9, 4  ;;  %s3377_s10 = int_to_ptr.vmem [resolvable:$false] %s3376_s10 }
  0xa8   : > { %1323 = vmatpush1.bf16.msra.mxu0 %v2986_v34  ;;  %v3084_v34 = vld [vmem:[#allocation5 + $0x294] ss:$40 sps:$4 sm:$0xff]   ;;  %p3373_p10 = scmp.ne.s32.totalorder %s3751_s6, %s3372_s22  ;;  %s3378_s12 = scalar_lea.vmem %s3377_s10, 256 }
  0xa9   : > { %1324 = vmatprep.subr.bf16.mxu0 %v2990_v35  ;;  %1364 = vmatpush1.bf16.msra.mxu1 %v2989_v36  ;;  %v3079_v35 = vld [vmem:[#allocation5 + $0x248] ss:$40 sps:$4 sm:$0xff]   ;;  %v3087_v36 = vld [vmem:[#allocation5 + $0x29c] ss:$40 sps:$4 sm:$0xff]   ;;  %p3379_p12 = scmp.lt.s32.totalorder %s3751_s6, %s3377_s10  ;;  %p3380_p2 = scmp.lt.s32.totalorder %s3378_s12, %s3372_s22 }
  0xaa   : > { %1365 = vmatprep.subr.bf16.mxu1 %v2993_v37  ;;  %v3082_v37 = vld [vmem:[#allocation5 + $0x290] ss:$40 sps:$4 sm:$0xff]   ;;  %p3374_p3 = pnand %p3373_p10, %p3632_p5 }
  0xab   : > { %p3381_p1 = por %p3380_p2, %p3379_p12 }
  0xac   : > { %1325 = vmatpush1.bf16.msra.mxu0 %v2992_v38  ;;  %v3090_v38 = vld [vmem:[#allocation5 + $0x2e4] ss:$40 sps:$4 sm:$0xff]   ;;  %p3375_p7 = pneg %p3374_p3 }
  0xad   : > { %1326 = vmatprep.subr.bf16.mxu0 %v2996_v39  ;;  %1366 = vmatpush1.bf16.msra.mxu1 %v2995_v40  ;;  %v3085_v39 = vld [vmem:[#allocation5 + $0x298] ss:$40 sps:$4 sm:$0xff]   ;;  %v3093_v40 = vld [vmem:[#allocation5 + $0x2ec] ss:$40 sps:$4 sm:$0xff]  }
  0xae   : > { %1367 = vmatprep.subr.bf16.mxu1 %v2999_v41  ;;  %v3088_v41 = vld [vmem:[#allocation5 + $0x2e0] ss:$40 sps:$4 sm:$0xff]   ;;  %p3382_p4 = pnand %p3381_p1, %p3375_p7 }
  0xb0   : > { %1327 = vmatpush1.bf16.msra.mxu0 %v2998_v42  ;;  %v3096_v42 = vld [vmem:[#allocation5 + $0x334] ss:$40 sps:$4 sm:$0xff]  }
  0xb1   : > { %1328 = vmatprep.subr.bf16.mxu0 %v3002_v43  ;;  %1368 = vmatpush1.bf16.msra.mxu1 %v3001_v44  ;;  %v3091_v43 = vld [vmem:[#allocation5 + $0x2e8] ss:$40 sps:$4 sm:$0xff]   ;;  %v3099_v44 = vld [vmem:[#allocation5 + $0x33c] ss:$40 sps:$4 sm:$0xff]  }
  0xb2   : > { %1369 = vmatprep.subr.bf16.mxu1 %v3005_v45  ;;  %v3094_v45 = vld [vmem:[#allocation5 + $0x330] ss:$40 sps:$4 sm:$0xff]  }
  0xb4   : > { %1329 = vmatpush1.bf16.msra.mxu0 %v3004_v47  ;;  %v3097_v47 = vld [vmem:[#allocation5 + $0x338] ss:$40 sps:$4 sm:$0xff]  }
  0xb5   : > { %1330 = vmatprep.subr.bf16.mxu0 %v3008_v49  ;;  %1370 = vmatpush1.bf16.msra.mxu1 %v3007_v50  ;;  %v3100_v49 = vld [vmem:[#allocation5 + $0x380] ss:$40 sps:$4 sm:$0xff]   ;;  %v3105_v50 = vld [vmem:[#allocation5 + $0x38c] ss:$40 sps:$4 sm:$0xff]  }
  0xb6   : > { %1371 = vmatprep.subr.bf16.mxu1 %v3011_v51  ;;  %v3103_v51 = vld [vmem:[#allocation5 + $0x388] ss:$40 sps:$4 sm:$0xff]  }
  0xb8   : > { %1331 = vmatpush1.bf16.msra.mxu0 %v3010_v52  ;;  %v3108_v52 = vld [vmem:[#allocation5 + $0x3d4] ss:$40 sps:$4 sm:$0xff]  }
  0xb9   : > { %1332 = vmatprep.subr.bf16.mxu0 %v3014_v53  ;;  %1372 = vmatpush1.bf16.msra.mxu1 %v3013_v54  ;;  %v3106_v53 = vld [vmem:[#allocation5 + $0x3d0] ss:$40 sps:$4 sm:$0xff]   ;;  %v3111_v54 = vld [vmem:[#allocation5 + $0x3dc] ss:$40 sps:$4 sm:$0xff]  }
  0xba   : > { %1373 = vmatprep.subr.bf16.mxu1 %v3017_v55  ;;  %v3109_v55 = vld [vmem:[#allocation5 + $0x3d8] ss:$40 sps:$4 sm:$0xff]  }
  0xbc   : > { %1333 = vmatpush1.bf16.msra.mxu0 %v3016_v56  ;;  %v3114_v56 = vld [vmem:[#allocation5 + $0x424] ss:$40 sps:$4 sm:$0xff]  }
  0xbd   : > { %1334 = vmatprep.subr.bf16.mxu0 %v3020_v57  ;;  %1374 = vmatpush1.bf16.msra.mxu1 %v3019_v58  ;;  %v3112_v57 = vld [vmem:[#allocation5 + $0x420] ss:$40 sps:$4 sm:$0xff]   ;;  %v3117_v58 = vld [vmem:[#allocation5 + $0x42c] ss:$40 sps:$4 sm:$0xff]  }
  0xbe   : > { %1375 = vmatprep.subr.bf16.mxu1 %v3023_v59  ;;  %v3115_v59 = vld [vmem:[#allocation5 + $0x428] ss:$40 sps:$4 sm:$0xff]  }
  0xc0   : > { %1335 = vmatpush1.bf16.msra.mxu0 %v3022_v60  ;;  %v3120_v60 = vld [vmem:[#allocation5 + $0x474] ss:$40 sps:$4 sm:$0xff]  }
  0xc1   : > { %1336 = vmatprep.subr.bf16.mxu0 %v3026_v61  ;;  %1376 = vmatpush1.bf16.msra.mxu1 %v3025_v62  ;;  %v3118_v61 = vld [vmem:[#allocation5 + $0x470] ss:$40 sps:$4 sm:$0xff]   ;;  %v3123_v62 = vld [vmem:[#allocation5 + $0x47c] ss:$40 sps:$4 sm:$0xff]  }
  0xc2   : > { %1377 = vmatprep.subr.bf16.mxu1 %v3029_v63  ;;  %v3121_v63 = vld [vmem:[#allocation5 + $0x478] ss:$40 sps:$4 sm:$0xff]  }
  0xc4   : > { %1337 = vmatpush1.bf16.msra.mxu0 %v3028_v0  ;;  %v3126_v0 = vld [vmem:[#allocation5 + $0x4c4] ss:$40 sps:$4 sm:$0xff]  }
  0xc5   : > { %1388 = vmatprep.subr.bf16.mxu0 %v3036_v1  ;;  %1378 = vmatpush1.bf16.msra.mxu1 %v3032_v2  ;;  %v3124_v1 = vld [vmem:[#allocation5 + $0x4c0] ss:$40 sps:$4 sm:$0xff]   ;;  %v3129_v2 = vld [vmem:[#allocation5 + $0x4cc] ss:$40 sps:$4 sm:$0xff]  }
  0xc6   : > { %1429 = vmatprep.subr.bf16.mxu1 %v3039_v4  ;;  %v3132_v4 = vld [vmem:[#allocation5 + $0x24] ss:$40 sps:$4 sm:$0xff]  }
  0xc7   : > { %1339 = vmatmul.mubr.bf16.vlgmr.msra.gmra.mrb[0].mxu0 %v3702_v3 }
  0xc8   : > { %1389 = vmatpush1.bf16.msra.mxu0 %v3034_v5  ;;  %1420 = vmatprep.mubr.bf16.mxu0 %v3698_v48  ;;  %v3127_v5 = vld [vmem:[#allocation5 + $0x4c8] ss:$40 sps:$4 sm:$0xff]  }
  0xc9   : > { %1380 = vmatmul.mubr.bf16.vlgmr.msra.gmra.mrb[0].mxu1 %v3702_v3  ;;  %1390 = vmatprep.subr.bf16.mxu0 %v3042_v6  ;;  %v3178_v6 = vld [vmem:[#allocation8 + $0x40] sm:$0xff]  }
  0xca   : > { %1430 = vmatpush1.bf16.msra.mxu1 %v3037_v7  ;;  %1461 = vmatprep.mubr.bf16.mxu1 %v3698_v48  ;;  %v3130_v7 = vld [vmem:[#allocation5 + $0x20] ss:$40 sps:$4 sm:$0xff]  }
  0xcb   : > { %1431 = vmatprep.subr.bf16.mxu1 %v3045_v8  ;;  %v3135_v8 = vld [vmem:[#allocation5 + $0x74] ss:$40 sps:$4 sm:$0xff]  }
  0xcc   : > { %1391 = vmatpush1.bf16.msra.mxu0 %v3040_v9  ;;  %v3179_v9 = vld [vmem:[#allocation8] sm:$0xff]  }
  0xcd   : > { %1392 = vmatprep.subr.bf16.mxu0 %v3048_v10  ;;  %v3180_v10 = vld [vmem:[#allocation8 + $0x48] sm:$0xff]  }
  0xce   : > { %1432 = vmatpush1.bf16.msra.mxu1 %v3043_v11  ;;  %v3133_v11 = vld [vmem:[#allocation5 + $0x70] ss:$40 sps:$4 sm:$0xff]  }
  0xcf   : > { %1433 = vmatprep.subr.bf16.mxu1 %v3051_v12  ;;  %v3138_v12 = vld [vmem:[#allocation5 + $0xc4] ss:$40 sps:$4 sm:$0xff]  }
  0xd0   : > { %1393 = vmatpush1.bf16.msra.mxu0 %v3046_v13  ;;  %v3181_v13 = vld [vmem:[#allocation8 + $0x8] sm:$0xff]  }
  0xd1   : > { %1394 = vmatprep.subr.bf16.mxu0 %v3054_v14  ;;  %v3182_v14 = vld [vmem:[#allocation8 + $0x50] sm:$0xff]  }
  0xd2   : > { %1434 = vmatpush1.bf16.msra.mxu1 %v3049_v15  ;;  %v3136_v15 = vld [vmem:[#allocation5 + $0xc0] ss:$40 sps:$4 sm:$0xff]  }
  0xd3   : > { %1435 = vmatprep.subr.bf16.mxu1 %v3057_v16  ;;  %v3141_v16 = vld [vmem:[#allocation5 + $0x114] ss:$40 sps:$4 sm:$0xff]  }
  0xd4   : > { %1395 = vmatpush1.bf16.msra.mxu0 %v3052_v17  ;;  %v3183_v17 = vld [vmem:[#allocation8 + $0x10] sm:$0xff]  }
  0xd5   : > { %1396 = vmatprep.subr.bf16.mxu0 %v3060_v18  ;;  %v3184_v18 = vld [vmem:[#allocation8 + $0x58] sm:$0xff]  }
  0xd6   : > { %1436 = vmatpush1.bf16.msra.mxu1 %v3055_v19  ;;  %v3139_v19 = vld [vmem:[#allocation5 + $0x110] ss:$40 sps:$4 sm:$0xff]  }
  0xd7   : > { %1437 = vmatprep.subr.bf16.mxu1 %v3063_v20  ;;  %v3144_v20 = vld [vmem:[#allocation5 + $0x164] ss:$40 sps:$4 sm:$0xff]  }
  0xd8   : > { %1397 = vmatpush1.bf16.msra.mxu0 %v3058_v21  ;;  %v3185_v21 = vld [vmem:[#allocation8 + $0x18] sm:$0xff]  }
  0xd9   : > { %1398 = vmatprep.subr.bf16.mxu0 %v3066_v22  ;;  %v3142_v22 = vld [vmem:[#allocation5 + $0x160] ss:$40 sps:$4 sm:$0xff]  }
  0xda   : > { %1438 = vmatpush1.bf16.msra.mxu1 %v3061_v23  ;;  %v3147_v23 = vld [vmem:[#allocation5 + $0x1b4] ss:$40 sps:$4 sm:$0xff]  }
  0xdb   : > { %1439 = vmatprep.subr.bf16.mxu1 %v3069_v24  ;;  %v3187_v24 = vld [vmem:[#allocation8 + $0x20] sm:$0xff]  }
  0xdc   : > { %1399 = vmatpush1.bf16.msra.mxu0 %v3064_v25  ;;  %v3188_v25 = vld [vmem:[#allocation8 + $0x68] sm:$0xff]  }
  0xdd   : > { %1400 = vmatprep.subr.bf16.mxu0 %v3072_v26  ;;  %v3145_v26 = vld [vmem:[#allocation5 + $0x1b0] ss:$40 sps:$4 sm:$0xff]  }
  0xde   : > { %1440 = vmatpush1.bf16.msra.mxu1 %v3067_v27  ;;  %v3150_v27 = vld [vmem:[#allocation5 + $0x204] ss:$40 sps:$4 sm:$0xff]  }
  0xdf   : > { %1441 = vmatprep.subr.bf16.mxu1 %v3075_v28  ;;  %v3148_v28 = vld [vmem:[#allocation5 + $0x200] ss:$40 sps:$4 sm:$0xff]  }
  0xe0   : > { %1401 = vmatpush1.bf16.msra.mxu0 %v3070_v29  ;;  %v3189_v29 = vld [vmem:[#allocation8 + $0x28] sm:$0xff]  }
  0xe1   : > { %1402 = vmatprep.subr.bf16.mxu0 %v3078_v30  ;;  %v3153_v30 = vld [vmem:[#allocation5 + $0x254] ss:$40 sps:$4 sm:$0xff]  }
  0xe2   : > { %1442 = vmatpush1.bf16.msra.mxu1 %v3073_v31  ;;  %v3190_v31 = vld [vmem:[#allocation8 + $0x70] sm:$0xff]  }
  0xe3   : > { %1443 = vmatprep.subr.bf16.mxu1 %v3081_v32  ;;  %v3151_v32 = vld [vmem:[#allocation5 + $0x250] ss:$40 sps:$4 sm:$0xff]  }
  0xe4   : > { %1403 = vmatpush1.bf16.msra.mxu0 %v3076_v33  ;;  %v3191_v33 = vld [vmem:[#allocation8 + $0x30] sm:$0xff]  }
  0xe5   : > { %1404 = vmatprep.subr.bf16.mxu0 %v3084_v34  ;;  %v3156_v34 = vld [vmem:[#allocation5 + $0x2a4] ss:$40 sps:$4 sm:$0xff]  }
  0xe6   : > { %1444 = vmatpush1.bf16.msra.mxu1 %v3079_v35  ;;  %v3192_v35 = vld [vmem:[#allocation8 + $0x78] sm:$0xff]  }
  0xe7   : > { %1445 = vmatprep.subr.bf16.mxu1 %v3087_v36  ;;  %v3154_v36 = vld [vmem:[#allocation5 + $0x2a0] ss:$40 sps:$4 sm:$0xff]  }
  0xe8   : > { %1405 = vmatpush1.bf16.msra.mxu0 %v3082_v37  ;;  %v3193_v37 = vld [vmem:[#allocation8 + $0x38] sm:$0xff]  }
  0xe9   : > { %1406 = vmatprep.subr.bf16.mxu0 %v3090_v38  ;;  %v3159_v38 = vld [vmem:[#allocation5 + $0x2f4] ss:$40 sps:$4 sm:$0xff]  }
  0xea   : > { %1446 = vmatpush1.bf16.msra.mxu1 %v3085_v39  ;;  %v3194_v39 = vld [vmem:[#allocation8 + $0xc0] sm:$0xff]  }
  0xeb   : > { %1447 = vmatprep.subr.bf16.mxu1 %v3093_v40  ;;  %v3157_v40 = vld [vmem:[#allocation5 + $0x2f0] ss:$40 sps:$4 sm:$0xff]  }
  0xec   : > { %1407 = vmatpush1.bf16.msra.mxu0 %v3088_v41  ;;  %v3162_v41 = vld [vmem:[#allocation5 + $0x344] ss:$40 sps:$4 sm:$0xff]  }
  0xed   : > { %1408 = vmatprep.subr.bf16.mxu0 %v3096_v42  ;;  %v3160_v42 = vld [vmem:[#allocation5 + $0x340] ss:$40 sps:$4 sm:$0xff]  }
  0xee   : > { %1448 = vmatpush1.bf16.msra.mxu1 %v3091_v43  ;;  %v3165_v43 = vld [vmem:[#allocation5 + $0x394] ss:$40 sps:$4 sm:$0xff]  }
  0xef   : > { %1449 = vmatprep.subr.bf16.mxu1 %v3099_v44  ;;  %v3163_v44 = vld [vmem:[#allocation5 + $0x390] ss:$40 sps:$4 sm:$0xff]  }
  0xf0   : > { %1409 = vmatpush1.bf16.msra.mxu0 %v3094_v45  ;;  %v3168_v45 = vld [vmem:[#allocation5 + $0x3e4] ss:$40 sps:$4 sm:$0xff]  }
  0xf1   : > { %1410 = vmatprep.subr.bf16.mxu0 %v3102_v46  ;;  %v3166_v46 = vld [vmem:[#allocation5 + $0x3e0] ss:$40 sps:$4 sm:$0xff]  }
  0xf2   : > { %1450 = vmatpush1.bf16.msra.mxu1 %v3097_v47  ;;  %v3171_v47 = vld [vmem:[#allocation5 + $0x434] ss:$40 sps:$4 sm:$0xff]  }
  0xf3   : > { %1451 = vmatprep.subr.bf16.mxu1 %v3105_v50  ;;  %v3174_v50 = vld [vmem:[#allocation5 + $0x484] ss:$40 sps:$4 sm:$0xff]  }
  0xf4   : > { %1411 = vmatpush1.bf16.msra.mxu0 %v3100_v49  ;;  %v3169_v49 = vld [vmem:[#allocation5 + $0x430] ss:$40 sps:$4 sm:$0xff]  }
  0xf5   : > { %1412 = vmatprep.subr.bf16.mxu0 %v3108_v52  ;;  %v3177_v52 = vld [vmem:[#allocation5 + $0x4d4] ss:$40 sps:$4 sm:$0xff]  }
  0xf6   : > { %1452 = vmatpush1.bf16.msra.mxu1 %v3103_v51  ;;  %v3172_v51 = vld [vmem:[#allocation5 + $0x480] ss:$40 sps:$4 sm:$0xff]  }
  0xf7   : > { %1453 = vmatprep.subr.bf16.mxu1 %v3111_v54  ;;  %v3210_v54 = vld [vmem:[#allocation8 + $0x140] sm:$0xff]  }
  0xf8   : > { %1413 = vmatpush1.bf16.msra.mxu0 %v3106_v53  ;;  %v3175_v53 = vld [vmem:[#allocation5 + $0x4d0] ss:$40 sps:$4 sm:$0xff]  }
  0xf9   : > { %1414 = vmatprep.subr.bf16.mxu0 %v3114_v56  ;;  %v3214_v56 = vld [vmem:[#allocation8 + $0x148] sm:$0xff]  }
  0xfa   : > { %1454 = vmatpush1.bf16.msra.mxu1 %v3109_v55  ;;  %v3211_v55 = vld [vmem:[#allocation8 + $0x100] sm:$0xff]  }
  0xfb   : > { %1455 = vmatprep.subr.bf16.mxu1 %v3117_v58  ;;  %v3218_v58 = vld [vmem:[#allocation8 + $0x150] sm:$0xff]  }
  0xfc   : > { %1415 = vmatpush1.bf16.msra.mxu0 %v3112_v57  ;;  %v3215_v57 = vld [vmem:[#allocation8 + $0x108] sm:$0xff]  }
  0xfd   : > { %1416 = vmatprep.subr.bf16.mxu0 %v3120_v60  ;;  %v3222_v60 = vld [vmem:[#allocation8 + $0x158] sm:$0xff]  }
  0xfe   : > { %1456 = vmatpush1.bf16.msra.mxu1 %v3115_v59  ;;  %v3219_v59 = vld [vmem:[#allocation8 + $0x110] sm:$0xff]  }
  0xff   : > { %1457 = vmatprep.subr.bf16.mxu1 %v3123_v62  ;;  %v3226_v62 = vld [vmem:[#allocation8 + $0x160] sm:$0xff]  }
 0x100   : > { %1417 = vmatpush1.bf16.msra.mxu0 %v3118_v61  ;;  %v3223_v61 = vld [vmem:[#allocation8 + $0x118] sm:$0xff]  }
 0x101   : > { %1418 = vmatprep.subr.bf16.mxu0 %v3126_v0  ;;  %v3230_v0 = vld [vmem:[#allocation8 + $0x168] sm:$0xff]  }
 0x102   : > { %1458 = vmatpush1.bf16.msra.mxu1 %v3121_v63  ;;  %v3227_v63 = vld [vmem:[#allocation8 + $0x120] sm:$0xff]  }
 0x103   : > { %1459 = vmatprep.subr.bf16.mxu1 %v3129_v2  ;;  %v3235_v2 = vld [vmem:[#allocation8 + $0x130] sm:$0xff]  }
 0x104   : > { %1419 = vmatpush1.bf16.msra.mxu0 %v3124_v1  ;;  %v3231_v1 = vld [vmem:[#allocation8 + $0x128] sm:$0xff]  }
 0x105   : > { %1470 = vmatprep.subr.bf16.mxu0 %v3132_v4  ;;  %v3238_v4 = vld [vmem:[#allocation8 + $0x178] sm:$0xff]  }
 0x106   : > { %1460 = vmatpush1.bf16.msra.mxu1 %v3127_v5  ;;  %v3239_v5 = vld [vmem:[#allocation8 + $0x138] sm:$0xff]  }
 0x107   : > { %1421 = vmatmul.mubr.bf16.vlgmr.msra.gmra.mrb[4].mxu0 %v3702_v3  ;;  %2745 = vmatprep.subr.bf16.mxu1 %v3178_v6  ;;  %v3242_v6 = vld [vmem:[#allocation8 + $0x240] sm:$0xff]  }
 0x108   : > { %1471 = vmatpush1.bf16.msra.mxu0 %v3130_v7  ;;  %1502 = vmatprep.mubr.bf16.mxu0 %v3698_v48  ;;  %v3186_v48 = vld [vmem:[#allocation8 + $0x60] sm:$0xff]   ;;  %v449_v7 = vlaneseq }
 0x109   : > { %1462 = vmatmul.mubr.bf16.vlgmr.msra.gmra.mrb[4].mxu1 %v3702_v3  ;;  %1472 = vmatprep.subr.bf16.mxu0 %v3135_v8 }
 0x10a   : > { %2746 = vmatpush3.bf16.msra.mxu1 %v3179_v9  ;;  %v3712_v8 = vshrl.u32 %v449_v7, 7 }
 0x10b   : > { %2747 = vmatprep.subr.bf16.mxu1 %v3180_v10  ;;  %v3715_v10 = vld [vmem:[#allocation7] sm:$0xff] }
 0x10c   : > { %1473 = vmatpush1.bf16.msra.mxu0 %v3133_v11  ;;  %v451_v9 = vsub.s32 0, %v3712_v8  ;;  %v455_v11 = vsub.s32 1, %v3712_v8 }
 0x10d   : > { %1474 = vmatprep.subr.bf16.mxu0 %v3138_v12  ;;  %v463_v12 = vsub.s32 3, %v3712_v8 }
 0x10e   : > { %2748 = vmatpush3.bf16.msra.mxu1 %v3181_v13  ;;  %v452_v13 = vrot.slane %v3715_v10, %v451_v9 }
 0x10f   : > { %2749 = vmatprep.subr.bf16.mxu1 %v3182_v14  ;;  %v456_v14 = vrot.slane %v3715_v10, %v455_v11 }
 0x110   : > { %1475 = vmatpush1.bf16.msra.mxu0 %v3136_v15 }
 0x111   : > { %1476 = vmatprep.subr.bf16.mxu0 %v3141_v16  ;;  %v464_v16 = vrot.slane %v3715_v10, %v463_v12 }
 0x112   : > { %2750 = vmatpush3.bf16.msra.mxu1 %v3183_v17 }
 0x113   : > { %2751 = vmatprep.subr.bf16.mxu1 %v3184_v18 }
 0x114   : > { %1477 = vmatpush1.bf16.msra.mxu0 %v3139_v19 }
 0x115   : > { %1478 = vmatprep.subr.bf16.mxu0 %v3144_v20 }
 0x116   : > { %2752 = vmatpush3.bf16.msra.mxu1 %v3185_v21 }
 0x117   : > { %2753 = vmatprep.subr.bf16.mxu1 %v3186_v48 }
 0x118   : > { %1479 = vmatpush1.bf16.msra.mxu0 %v3142_v22 }
 0x119   : > { %1480 = vmatprep.subr.bf16.mxu0 %v3147_v23 }
 0x11a   : > { %2754 = vmatpush3.bf16.msra.mxu1 %v3187_v24 }
 0x11b   : > { %2755 = vmatprep.subr.bf16.mxu1 %v3188_v25  ;;  %v3195_v25 = vld [vmem:[#allocation8 + $0x80] sm:$0xff]  }
 0x11c   : > { %1481 = vmatpush1.bf16.msra.mxu0 %v3145_v26 }
 0x11d   : > { %1482 = vmatprep.subr.bf16.mxu0 %v3150_v27 }
 0x11e   : > { %2756 = vmatpush3.bf16.msra.mxu1 %v3189_v29 }
 0x11f   : > { %2757 = vmatprep.subr.bf16.mxu1 %v3190_v31  ;;  %v3197_v31 = vld [vmem:[#allocation8 + $0x88] sm:$0xff]  }
 0x120   : > { %1483 = vmatpush1.bf16.msra.mxu0 %v3148_v28  ;;  %v3196_v28 = vld [vmem:[#allocation8 + $0xc8] sm:$0xff]  }
 0x121   : > { %1484 = vmatprep.subr.bf16.mxu0 %v3153_v30 }
 0x122   : > { %2758 = vmatpush3.bf16.msra.mxu1 %v3191_v33  ;;  %v3199_v33 = vld [vmem:[#allocation8 + $0x90] sm:$0xff]  }
 0x123   : > { %2759 = vmatprep.subr.bf16.mxu1 %v3192_v35  ;;  %v3201_v35 = vld [vmem:[#allocation8 + $0x98] sm:$0xff]  }
 0x124   : > { %1485 = vmatpush1.bf16.msra.mxu0 %v3151_v32  ;;  %v3198_v32 = vld [vmem:[#allocation8 + $0xd0] sm:$0xff]  }
 0x125   : > { %1486 = vmatprep.subr.bf16.mxu0 %v3156_v34  ;;  %v3200_v34 = vld [vmem:[#allocation8 + $0xd8] sm:$0xff]  }
 0x126   : > { %2760 = vmatpush3.bf16.msra.mxu1 %v3193_v37  ;;  %v3203_v37 = vld [vmem:[#allocation8 + $0xa0] sm:$0xff]  }
 0x127   : > { %2767 = vmatprep.subr.bf16.mxu1 %v3194_v39  ;;  %v459_v39 = vsub.s32 2, %v3712_v8 }
 0x128   : > { %1487 = vmatpush1.bf16.msra.mxu0 %v3154_v36  ;;  %v3202_v36 = vld [vmem:[#allocation8 + $0xe0] sm:$0xff]  }
 0x129   : > { %1488 = vmatprep.subr.bf16.mxu0 %v3159_v38  ;;  %v3204_v38 = vld [vmem:[#allocation8 + $0xe8] sm:$0xff]  }
 0x12c   : > { %1489 = vmatpush1.bf16.msra.mxu0 %v3157_v40  ;;  %v3205_v40 = vld [vmem:[#allocation8 + $0xa8] sm:$0xff]  }
 0x12d   : > { %1490 = vmatprep.subr.bf16.mxu0 %v3162_v41  ;;  %v3206_v41 = vld [vmem:[#allocation8 + $0xf0] sm:$0xff]  }
 0x130   : > { %1491 = vmatpush1.bf16.msra.mxu0 %v3160_v42  ;;  %v460_v42 = vrot.slane %v3715_v10, %v459_v39  ;;  %v3255_v39 = vld [vmem:[#allocation8 + $0x230] sm:$0xff]  }
 0x131   : > { %1492 = vmatprep.subr.bf16.mxu0 %v3165_v43  ;;  %v3207_v43 = vld [vmem:[#allocation8 + $0xb0] sm:$0xff]  }
 0x134   : > { %1493 = vmatpush1.bf16.msra.mxu0 %v3163_v44  ;;  %v3208_v44 = vld [vmem:[#allocation8 + $0xf8] sm:$0xff]  }
 0x135   : > { %1494 = vmatprep.subr.bf16.mxu0 %v3168_v45 }
 0x138   : > { %1495 = vmatpush1.bf16.msra.mxu0 %v3166_v46  ;;  %v3209_v46 = vld [vmem:[#allocation8 + $0xb8] sm:$0xff]  }
 0x139   : > { %1496 = vmatprep.subr.bf16.mxu0 %v3171_v47  ;;  %v3212_v47 = vld [vmem:[#allocation8 + $0x1c0] sm:$0xff]  }
 0x13c   : > { %1497 = vmatpush1.bf16.msra.mxu0 %v3169_v49 }
 0x13d   : > { %1498 = vmatprep.subr.bf16.mxu0 %v3174_v50  ;;  %v3213_v50 = vld [vmem:[#allocation8 + $0x180] sm:$0xff]  }
 0x140   : > { %1499 = vmatpush1.bf16.msra.mxu0 %v3172_v51  ;;  %v3216_v51 = vld [vmem:[#allocation8 + $0x1c8] sm:$0xff]  }
 0x141   : > { %1500 = vmatprep.subr.bf16.mxu0 %v3177_v52  ;;  %v3217_v52 = vld [vmem:[#allocation8 + $0x188] sm:$0xff]  }
 0x144   : > { %1501 = vmatpush1.bf16.msra.mxu0 %v3175_v53  ;;  %v3220_v53 = vld [vmem:[#allocation8 + $0x1d0] sm:$0xff]  }
 0x145   : > { %2789 = vmatprep.subr.bf16.mxu0 %v3210_v54  ;;  %v3221_v54 = vld [vmem:[#allocation8 + $0x190] sm:$0xff]  }
 0x147   : > { %1503 = vmatmul.mubr.bf16.vlgmr.msra.gmra.mrb[8].mxu0 %v3702_v3  ;;  %v3234_v3 = vld [vmem:[#allocation8 + $0x170] sm:$0xff]  }
 0x148   : > { %2790 = vmatpush3.bf16.msra.mxu0 %v3211_v55  ;;  %v3224_v55 = vld [vmem:[#allocation8 + $0x1d8] sm:$0xff]  }
 0x149   : > { %2791 = vmatprep.subr.bf16.mxu0 %v3214_v56  ;;  %v3225_v56 = vld [vmem:[#allocation8 + $0x198] sm:$0xff]  }
 0x14c   : > { %2792 = vmatpush3.bf16.msra.mxu0 %v3215_v57  ;;  %v3228_v57 = vld [vmem:[#allocation8 + $0x1e0] sm:$0xff]  }
 0x14d   : > { %2793 = vmatprep.subr.bf16.mxu0 %v3218_v58  ;;  %v3229_v58 = vld [vmem:[#allocation8 + $0x1a0] sm:$0xff]  }
 0x150   : > { %2794 = vmatpush3.bf16.msra.mxu0 %v3219_v59  ;;  %v3232_v59 = vld [vmem:[#allocation8 + $0x1e8] sm:$0xff]  }
 0x151   : > { %2795 = vmatprep.subr.bf16.mxu0 %v3222_v60  ;;  %v3233_v60 = vld [vmem:[#allocation8 + $0x1a8] sm:$0xff]  }
 0x154   : > { %2796 = vmatpush3.bf16.msra.mxu0 %v3223_v61  ;;  %v467_v61 = vsub.s32 4, %v3712_v8 }
 0x155   : > { %2797 = vmatprep.subr.bf16.mxu0 %v3226_v62  ;;  %v3236_v62 = vld [vmem:[#allocation8 + $0x1f0] sm:$0xff]  }
 0x158   : > { %2798 = vmatpush3.bf16.msra.mxu0 %v3227_v63  ;;  %v471_v63 = vsub.s32 5, %v3712_v8 }
 0x159   : > { %2799 = vmatprep.subr.bf16.mxu0 %v3230_v0  ;;  %v475_v0 = vsub.s32 6, %v3712_v8 }
 0x15c   : > { %2800 = vmatpush3.bf16.msra.mxu0 %v3231_v1  ;;  %v3237_v1 = vld [vmem:[#allocation8 + $0x1b0] sm:$0xff]  }
 0x15d   : > { %2801 = vmatprep.subr.bf16.mxu0 %v3234_v3  ;;  %v479_v3 = vsub.s32 7, %v3712_v8  ;;  %v2659_v8 = vld [vmem:[%s3797_s4] ss:$0 sm:$0xff] }
 0x15f   : > { %v480_v12 = vrot.slane %v3715_v10, %v479_v3 }
 0x160   : > { %2802 = vmatpush3.bf16.msra.mxu0 %v3235_v2  ;;  %v468_v2 = vrot.slane %v3715_v10, %v467_v61 }
 0x161   : > { %2803 = vmatprep.subr.bf16.mxu0 %v3238_v4  ;;  %v3240_v4 = vld [vmem:[#allocation8 + $0x1f8] sm:$0xff]  }
 0x164   : > { %2804 = vmatpush3.bf16.msra.mxu0 %v3239_v5  ;;  %v472_v5 = vrot.slane %v3715_v10, %v471_v63 }
 0x165   : > { %2833 = vmatprep.subr.bf16.mxu0 %v3242_v6  ;;  %v476_v6 = vrot.slane %v3715_v10, %v475_v0 }
 0x19a   : > { %v1340_v15 = vpop.f32.mrb[0].mxu0 }
 0x19b   : > { %v1341_v17 = vadd.f32 %v1340_v15, %v452_v13  ;;  %v1342_v18 = vpop.f32.mrb[1].mxu0  ;;  %v3241_v13 = vld [vmem:[#allocation8 + $0x1b8] sm:$0xff]  }
 0x19c   : > { %v1343_v19 = vadd.f32 %v1342_v18, %v456_v14  ;;  %v1344_v20 = vpop.f32.mrb[2].mxu0  ;;  %v1381_v21 = vpop.f32.mrb[0].mxu1 }
 0x19d   : > { %v1511_v48 = vpack.c.bf16 %v1341_v17, %v1341_v17  ;;  %v1345_v22 = vpop.f32.mrb[3].mxu0  ;;  %v1383_v23 = vpop.f32.mrb[1].mxu1  ;;  %v1382_v45 = vadd.f32 %v1381_v21, %v460_v42  ;;  %v446_v42 = vld [vmem:[#allocation7 + $0x8] sm:$0x3] }
 0x19e   : > { %v1512_v24 = vpack.c.bf16 %v1343_v19, %v1343_v19  ;;  %v1384_v26 = vadd.f32 %v1383_v23, %v464_v16  ;;  %v1385_v27 = vpop.f32.mrb[2].mxu1 }
 0x19f   : > { %v1386_v29 = vpop.f32.mrb[3].mxu1  ;;  %v1513_v49 = vpack.c.bf16 %v1382_v45, %v1382_v45  ;;  %v3244_v27 = vld [vmem:[#allocation8 + $0x248] sm:$0xff]  }
 0x1a0   : > { %2200 = vmatprep.mubr.bf16.mxu1 %v1512_v24  ;;  %v1514_v30 = vpack.c.bf16 %v1384_v26, %v1384_v26  ;;  %v3243_v24 = vld [vmem:[#allocation8 + $0x200] sm:$0xff]   ;;  %v3245_v29 = vld [vmem:[#allocation8 + $0x208] sm:$0xff]  }
 0x1a1   : > { %2201 = vmatmul.mubr.bf16.vlgmr.msra.gmra.mrb[8].mxu1 %v1511_v48 }
 0x1a2   : > { %2768 = vmatpush3.bf16.msra.mxu1 %v3195_v25  ;;  %2240 = vmatprep.mubr.bf16.mxu1 %v1514_v30  ;;  %v3246_v30 = vld [vmem:[#allocation8 + $0x250] sm:$0xff]  }
 0x1a3   : > { %2769 = vmatprep.subr.bf16.mxu1 %v3196_v28 }
 0x1a6   : > { %2770 = vmatpush3.bf16.msra.mxu1 %v3197_v31  ;;  %v3247_v31 = vld [vmem:[#allocation8 + $0x210] sm:$0xff]  }
 0x1a7   : > { %2771 = vmatprep.subr.bf16.mxu1 %v3198_v32  ;;  %v3248_v32 = vld [vmem:[#allocation8 + $0x258] sm:$0xff]  }
 0x1aa   : > { %2772 = vmatpush3.bf16.msra.mxu1 %v3199_v33  ;;  %v3249_v33 = vld [vmem:[#allocation8 + $0x218] sm:$0xff]  }
 0x1ab   : > { %2773 = vmatprep.subr.bf16.mxu1 %v3200_v34  ;;  %v3250_v34 = vld [vmem:[#allocation8 + $0x260] sm:$0xff]  }
 0x1ae   : > { %2774 = vmatpush3.bf16.msra.mxu1 %v3201_v35  ;;  %v3251_v35 = vld [vmem:[#allocation8 + $0x220] sm:$0xff]  }
 0x1af   : > { %2775 = vmatprep.subr.bf16.mxu1 %v3202_v36  ;;  %v3252_v36 = vld [vmem:[#allocation8 + $0x268] sm:$0xff]  }
 0x1b2   : > { %2776 = vmatpush3.bf16.msra.mxu1 %v3203_v37  ;;  %v3253_v37 = vld [vmem:[#allocation8 + $0x228] sm:$0xff]  }
 0x1b3   : > { %2777 = vmatprep.subr.bf16.mxu1 %v3204_v38  ;;  %v3254_v38 = vld [vmem:[#allocation8 + $0x270] sm:$0xff]  }
 0x1b6   : > { %2778 = vmatpush3.bf16.msra.mxu1 %v3205_v40  ;;  %v3256_v40 = vld [vmem:[#allocation8 + $0x278] sm:$0xff]  }
 0x1b7   : > { %2779 = vmatprep.subr.bf16.mxu1 %v3206_v41  ;;  %v3257_v41 = vld [vmem:[#allocation8 + $0x238] sm:$0xff]  }
 0x1ba   : > { %2780 = vmatpush3.bf16.msra.mxu1 %v3207_v43  ;;  %v484_v43 = vrot.slane %v446_v42, %v451_v9 }
 0x1bb   : > { %2781 = vmatprep.subr.bf16.mxu1 %v3208_v44  ;;  %v488_v44 = vrot.slane %v446_v42, %v455_v11 }
 0x1be   : > { %2782 = vmatpush3.bf16.msra.mxu1 %v3209_v46 }
 0x1bf   : > { %2811 = vmatprep.subr.bf16.mxu1 %v3212_v47 }
 0x1c1   : > { %2241 = vmatmul.mubr.bf16.vlgmr.msra.gmra.mrb[12].mxu1 %v1513_v49 }
 0x1c2   : > { %2812 = vmatpush3.bf16.msra.mxu1 %v3213_v50 }
 0x1c3   : > { %2813 = vmatprep.subr.bf16.mxu1 %v3216_v51 }
 0x1c6   : > { %2814 = vmatpush3.bf16.msra.mxu1 %v3217_v52 }
 0x1c7   : > { %2815 = vmatprep.subr.bf16.mxu1 %v3220_v53 }
 0x1ca   : > { %2816 = vmatpush3.bf16.msra.mxu1 %v3221_v54 }
 0x1cb   : > { %2817 = vmatprep.subr.bf16.mxu1 %v3224_v55 }
 0x1ce   : > { %2818 = vmatpush3.bf16.msra.mxu1 %v3225_v56 }
 0x1cf   : > { %2819 = vmatprep.subr.bf16.mxu1 %v3228_v57 }
 0x1d2   : > { %2820 = vmatpush3.bf16.msra.mxu1 %v3229_v58 }
 0x1d3   : > { %2821 = vmatprep.subr.bf16.mxu1 %v3232_v59 }
 0x1d6   : > { %2822 = vmatpush3.bf16.msra.mxu1 %v3233_v60 }
 0x1d7   : > { %2823 = vmatprep.subr.bf16.mxu1 %v3236_v62 }
 0x1da   : > { %v1422_v7 = vpop.f32.mrb[4].mxu0  ;;  %2824 = vmatpush3.bf16.msra.mxu1 %v3237_v1 }
 0x1db   : > { %v1423_v14 = vadd.f32 %v1422_v7, %v468_v2  ;;  %v1424_v15 = vpop.f32.mrb[5].mxu0  ;;  %2825 = vmatprep.subr.bf16.mxu1 %v3240_v4 }
 0x1dc   : > { %v1425_v16 = vadd.f32 %v1424_v15, %v472_v5  ;;  %v1426_v17 = vpop.f32.mrb[6].mxu0  ;;  %v1463_v18 = vpop.f32.mrb[4].mxu1 }
 0x1dd   : > { %v1515_v19 = vpack.c.bf16 %v1423_v14, %v1423_v14  ;;  %v1464_v20 = vadd.f32 %v1463_v18, %v476_v6  ;;  %v1427_v21 = vpop.f32.mrb[7].mxu0  ;;  %v1465_v48 = vpop.f32.mrb[5].mxu1 }
 0x1de   : > { %v1516_v22 = vpack.c.bf16 %v1425_v16, %v1425_v16  ;;  %v1466_v23 = vadd.f32 %v1465_v48, %v480_v12  ;;  %2826 = vmatpush3.bf16.msra.mxu1 %v3241_v13  ;;  %v1467_v25 = vpop.f32.mrb[6].mxu1 }
 0x1df   : > { %v1517_v26 = vpack.c.bf16 %v1464_v20, %v1464_v20  ;;  %v1468_v28 = vpop.f32.mrb[7].mxu1 }
 0x1e0   : > { %v1518_v10 = vpack.c.bf16 %v1466_v23, %v1466_v23  ;;  %2280 = vmatprep.mubr.bf16.mxu0 %v1516_v22 }
 0x1e1   : > { %2281 = vmatmul.mubr.bf16.vlgmr.msra.gmra.mrb[12].mxu0 %v1515_v19 }
 0x1e2   : > { %2320 = vmatprep.mubr.bf16.mxu1 %v1518_v10  ;;  %2834 = vmatpush3.bf16.msra.mxu0 %v3243_v24 }
 0x1e3   : > { %2321 = vmatmul.mubr.bf16.vlgmr.msra.gmra.mrb[16].mxu1 %v1517_v26  ;;  %2835 = vmatprep.subr.bf16.mxu0 %v3244_v27 }
 0x1e6   : > { %2836 = vmatpush3.bf16.msra.mxu0 %v3245_v29 }
 0x1e7   : > { %2837 = vmatprep.subr.bf16.mxu0 %v3246_v30 }
 0x1ea   : > { %2838 = vmatpush3.bf16.msra.mxu0 %v3247_v31 }
 0x1eb   : > { %2839 = vmatprep.subr.bf16.mxu0 %v3248_v32 }
 0x1ee   : > { %2840 = vmatpush3.bf16.msra.mxu0 %v3249_v33 }
 0x1ef   : > { %2841 = vmatprep.subr.bf16.mxu0 %v3250_v34 }
 0x1f2   : > { %2842 = vmatpush3.bf16.msra.mxu0 %v3251_v35 }
 0x1f3   : > { %2843 = vmatprep.subr.bf16.mxu0 %v3252_v36 }
 0x1f6   : > { %2844 = vmatpush3.bf16.msra.mxu0 %v3253_v37 }
 0x1f7   : > { %2845 = vmatprep.subr.bf16.mxu0 %v3254_v38 }
 0x1fa   : > { %2846 = vmatpush3.bf16.msra.mxu0 %v3255_v39 }
 0x1fb   : > { %2847 = vmatprep.subr.bf16.mxu0 %v3256_v40 }
 0x1fe   : > { %2848 = vmatpush3.bf16.msra.mxu0 %v3257_v41 }
 0x21a   : > { %v1504_v45 = vpop.f32.mrb[8].mxu0 }
 0x21b   : > { %v1505_v46 = vadd.f32 %v1504_v45, %v484_v43  ;;  %v1506_v47 = vpop.f32.mrb[9].mxu0 }
 0x21c   : > { %v1507_v49 = vadd.f32 %v1506_v47, %v488_v44  ;;  %v1508_v50 = vpop.f32.mrb[10].mxu0 }
 0x21d   : > { %v1509_v51 = vpop.f32.mrb[11].mxu0  ;;  %v1519_v53 = vpack.c.bf16 %v1505_v46, %v1505_v46 }
 0x21e   : > { %v1520_v52 = vpack.c.bf16 %v1507_v49, %v1507_v49 }
 0x220   : > { %2360 = vmatprep.mubr.bf16.mxu0 %v1520_v52 }
 0x221   : > { %2361 = vmatmul.mubr.bf16.vlgmr.msra.gmra.mrb[16].mxu0 %v1519_v53 }
 0x274   : > { %v2761_v54 = vpop.f32.mrb[8].mxu1 }
 0x275   : > { %v2762_v55 = vpop.f32.mrb[9].mxu1 }
 0x276   : > { %v2763_v56 = vadd.f32 %v2762_v55, %v2761_v54  ;;  %v2764_v57 = vpop.f32.mrb[10].mxu1 }
 0x277   : > { %v2765_v58 = vpop.f32.mrb[11].mxu1 }
 0x278   : > { %v2203_v59 = vadd.f32 %v2763_v56, %v2659_v8 }
 0x294   : > { %v2783_v9 = vpop.f32.mrb[12].mxu1 }
 0x295   : > { %v2784_v11 = vpop.f32.mrb[13].mxu1 }
 0x296   : > { %v2785_v60 = vadd.f32 %v2784_v11, %v2783_v9  ;;  %v2786_v61 = vpop.f32.mrb[14].mxu1 }
 0x297   : > { %v2787_v62 = vpop.f32.mrb[15].mxu1 }
 0x298   : > { %v2243_v63 = vadd.f32 %v2785_v60, %v2203_v59 }
 0x2b4   : > { %v2805_v0 = vpop.f32.mrb[12].mxu0 }
 0x2b5   : > { %v2806_v1 = vpop.f32.mrb[13].mxu0 }
 0x2b6   : > { %v2807_v3 = vadd.f32 %v2806_v1, %v2805_v0  ;;  %v2808_v2 = vpop.f32.mrb[14].mxu0  ;;  %v2827_v4 = vpop.f32.mrb[16].mxu1 }
 0x2b7   : > { %v2809_v5 = vpop.f32.mrb[15].mxu0  ;;  %v2828_v6 = vpop.f32.mrb[17].mxu1 }
 0x2b8   : > { %v2283_v7 = vadd.f32 %v2807_v3, %v2243_v63  ;;  %v2829_v12 = vadd.f32 %v2828_v6, %v2827_v4  ;;  %v2830_v13 = vpop.f32.mrb[18].mxu1 }
 0x2b9   : > { %v2831_v14 = vpop.f32.mrb[19].mxu1 }
 0x2ba   : > { %v2323_v15 = vadd.f32 %v2829_v12, %v2283_v7 }
 0x2f4   : > { %v2849_v16 = vpop.f32.mrb[16].mxu0 }
 0x2f5   : > { %v2850_v17 = vpop.f32.mrb[17].mxu0 }
 0x2f6   : > { %v2851_v18 = vadd.f32 %v2850_v17, %v2849_v16  ;;  %v2852_v19 = vpop.f32.mrb[18].mxu0 }
 0x2f7   : > { %v2853_v20 = vpop.f32.mrb[19].mxu0 }
 0x2f8   : > { %v2363_v21 = vadd.f32 %v2851_v18, %v2323_v15 }
 0x2fa   : > { %2368 = vst [vmem:[%s282_s13] sm:$0xff] %v2363_v21 }
 0x2fb   : > { %3385 = shalt.err (!%p3382_p4)
}
 0x2fc   : > { %s3386_s15 = scalar_lea.hbm %s3749_s8, 128  ;;  %s3390_s23 = scalar_lea.hbm %s3798_s5, 256 }
 0x2fd   : > { %p3387_p0 = scmp.ne.s32.totalorder %s3749_s8, %s3386_s15  ;;  %p3391_p8 = scmp.lt.u32.totalorder %s3749_s8, %s3798_s5 }
 0x2fe   : > { %p3392_p13 = scmp.lt.u32.totalorder %s3390_s23, %s3386_s15  ;;  %p3394_p10 = scmp.lt.u32.totalorder %s3386_s15, %s3749_s8 }
 0x2ff   : > { %p3388_p9 = pnand %p3387_p0, %p3632_p5 }
 0x300   : > { %p3393_p6 = por %p3392_p13, %p3391_p8 }
 0x301   : > { %p3389_p11 = pneg %p3388_p9 }
 0x302   : > { %p3395_p3 = por %p3394_p10, %p3393_p6 }
 0x304   : > { %p3396_p7 = pnand %p3395_p3, %p3389_p11 }
 0x306   : > { %3399 = shalt.err (!%p3396_p7)
}
 0x307   : > { %2869 = dma.vmem_to_hbm [thread:$0]  (%p3632_p5), %s3751_s6, 128, %s3749_s8, %s2370_s29  }
 0x308 PF: > { %s2395_s11 = sand.u32 1, %s3434_s18   ;;  %p3816_p12 = scmp.ne.s32.totalorder %s3803_s25, 0 }
 0x309   : > { %p3817_p2 = scmp.ge.s32.totalorder %s3446_s21, 2  ;;  %s2396_s13 = scalar_lea.sflag [#allocation4], %s2395_s11 }
 0x30b   : > { %p2886_p1 = pnand %p3817_p2, %p3816_p12 }
 0x30d   : > { %3429 = dma.done.wait (!%p2886_p1), %s2396_s13, 128  }
 0x30e   : > { %3431 = vsyncadd (!%p2886_p1), %s2396_s13, 4294967168  ;;  %p20_p4 = scmp.ge.s32.totalorder %s3618_s28, 4   ;;  %s3818_s18 = smov %s3438_s19 }
 0x30f   : > { %s3819_s19 = smov %s3442_s20  ;;  %s3820_s20 = smov %s3628_s27 }
 0x310   : > { %s3821_s21 = smov %s3618_s28  ;;  %22 = sbr.rel (!%p20_p4) target bundleno = 7 (0x7), region = 97 }
 0x317   :  { %2401 = vsyncpa [#allocation3], 1 }
 0x318   :  { %2403 = vsyncpa [#allocation3 + $0x1], 1 }
 0x319   :  { %2404 = vsyncpa [#allocation6], 1 }
 0x31a   :  { %2405 = vsyncpa [#allocation9], 1 }
 0x31b   :  { %2406 = vsyncpa [#allocation4], 1 }
 0x31c   :  { %2408 = vsyncpa [#allocation4 + $0x1], 1 }

</bundles_post_ra>
